<compile_context>
chip_gen: v6e
topology: v6e:2x2x1
jax: 0.10.0
libtpu: 0.0.40
codegen_flags: <defaults>
</compile_context>

<pallas_src>
import functools

import jax
import jax.numpy as jnp
from jax import lax
from jax.experimental import pallas as pl
from jax.experimental.pallas import tpu as pltpu


def lstm_net_kernel(x_ref, wih_ref, whh_ref, b_ref, wfc_ref, bfc_ref, out_ref,
                    *, seq_len, b_pad):
    """Full LSTM recurrence + final Linear, all in VMEM.

    x_ref   : (T * B_pad, I)  time-major rows (row t*B_pad + b = x[b, t, :])
    wih_ref : (I, 4H)         input->gates weight (transposed)
    whh_ref : (H, 4H)         hidden->gates weight (transposed)
    b_ref   : (1, 4H)         b_ih + b_hh  (f32)
    wfc_ref : (H, C)          fc weight (transposed)
    bfc_ref : (1, C)          fc bias (f32)
    out_ref : (B, C)
    """
    H = whh_ref.shape[0]
    B = out_ref.shape[0]

    # ---- Hoisted input projection + fused bias: ONE MXU matmul covering every
    # timestep, off the sequential critical path.  (T*B_pad, I) @ (I, 4H).
    g_all = (jnp.dot(x_ref[...], wih_ref[...],
                     preferred_element_type=jnp.float32)
             + b_ref[...])                                   # (T*B_pad, 4H) f32

    whh = whh_ref[...]                                        # hoisted load
    h = jnp.zeros((b_pad, H), jnp.float32)
    c = jnp.zeros((b_pad, H), jnp.float32)

    # ---- Fully-unrolled recurrence (seq_len is a compile-time constant); the
    # loop body only contains the h @ W_hh matmul and the gate nonlinearity.
    for t in range(seq_len):
        gates = g_all[t * b_pad:(t + 1) * b_pad, :] + jnp.dot(
            h.astype(whh_ref.dtype), whh,
            preferred_element_type=jnp.float32)               # (B_pad, 4H)
        # Two full-vreg EUP passes (sigmoid + tanh) instead of four sub-slices.
        sig = jax.nn.sigmoid(gates)
        tnh = jnp.tanh(gates)
        i_g = sig[:, 0 * H:1 * H]     # PyTorch gate order: i, f, g, o
        f_g = sig[:, 1 * H:2 * H]
        g_g = tnh[:, 2 * H:3 * H]
        o_g = sig[:, 3 * H:4 * H]
        c = f_g * c + i_g * g_g       # cell state kept in f32
        h = o_g * jnp.tanh(c)

    # ---- Final Linear on the last timestep's hidden state.
    fc = (jnp.dot(h.astype(wfc_ref.dtype), wfc_ref[...],
                  preferred_element_type=jnp.float32)
          + bfc_ref[...])                                     # (B_pad, C)
    out_ref[...] = fc[:B, :].astype(out_ref.dtype)


def lstm_net_forward(x, params, *, matmul_dtype=jnp.float32):
    """x: (B, T, I) float32, batch_first like PyTorch.  Returns (B, C).

    matmul_dtype=jnp.bfloat16 casts only MXU operands (x-projection, W_hh,
    W_fc) to bf16 (v6e/v7x bf16-native MXU); accumulation, biases, gate
    activations and cell state stay in f32.
    """
    W_ih, W_hh, b_ih, b_hh, W_fc, b_fc = params
    B, T, I = x.shape
    H = W_hh.shape[1]           # W_hh: (4H, H)
    C = W_fc.shape[0]           # W_fc: (C, H)

    # Pad batch to the sublane width (8) so each per-timestep gate block is a
    # whole, aligned vreg row-group inside the kernel.
    SUB = 8
    B_pad = ((B + SUB - 1) // SUB) * SUB
    B_pad = max(B_pad, SUB)

    # Tiny arrays: the transpose/pad/reshape here is negligible.  For large x
    # the projection would be done directly on the batch-first layout (or the
    # gate slab streamed by time-block) to avoid an HBM transpose round trip.
    x_tm = jnp.transpose(x, (1, 0, 2))                          # (T, B, I)
    x_tm = jnp.pad(x_tm, ((0, 0), (0, B_pad - B), (0, 0)))      # (T, B_pad, I)
    x2d = x_tm.reshape(T * B_pad, I).astype(matmul_dtype)       # time-major rows

    wih = W_ih.T.astype(matmul_dtype)                           # (I, 4H)
    whh = W_hh.T.astype(matmul_dtype)                           # (H, 4H)
    wfc = W_fc.T.astype(matmul_dtype)                           # (H, C)
    b_all = (b_ih + b_hh).reshape(1, 4 * H).astype(jnp.float32)
    bfc = b_fc.reshape(1, C).astype(jnp.float32)

    vmem = pl.BlockSpec(memory_space=pltpu.MemorySpace.VMEM)
    kernel = functools.partial(lstm_net_kernel, seq_len=T, b_pad=B_pad)
    out = pl.pallas_call(
        kernel,
        out_shape=jax.ShapeDtypeStruct((B, C), jnp.float32),
        in_specs=[vmem] * 6,
        out_specs=vmem,
    )(x2d, wih, whh, b_all, wfc, bfc)
    return out


def reference_forward(x, params):
    """Pure-JAX reference matching torch.nn.LSTM + Linear semantics."""
    W_ih, W_hh, b_ih, b_hh, W_fc, b_fc = params
    B = x.shape[0]
    H = W_hh.shape[1]
    h0 = jnp.zeros((B, H), jnp.float32)
    c0 = jnp.zeros((B, H), jnp.float32)

    def step(carry, x_t):
        h, c = carry
        gates = x_t @ W_ih.T + b_ih + h @ W_hh.T + b_hh
        i = jax.nn.sigmoid(gates[:, 0 * H:1 * H])
        f = jax.nn.sigmoid(gates[:, 1 * H:2 * H])
        g = jnp.tanh(gates[:, 2 * H:3 * H])
        o = jax.nn.sigmoid(gates[:, 3 * H:4 * H])
        c = f * c + i * g
        h = o * jnp.tanh(c)
        return (h, c), None

    (h_T, _), _ = lax.scan(step, (h0, c0), jnp.transpose(x, (1, 0, 2)))
    return h_T @ W_fc.T + b_fc


def init_params(key, input_size, hidden_size, num_classes):
    """Deterministic init, same shapes as nn.LSTM / nn.Linear parameters."""
    ks = jax.random.split(key, 6)
    k = 1.0 / jnp.sqrt(hidden_size)
    u = lambda kk, shape, bound: jax.random.uniform(
        kk, shape, jnp.float32, -bound, bound)
    W_ih = u(ks[0], (4 * hidden_size, input_size), k)   # weight_ih_l0
    W_hh = u(ks[1], (4 * hidden_size, hidden_size), k)  # weight_hh_l0
    b_ih = u(ks[2], (4 * hidden_size,), k)              # bias_ih_l0
    b_hh = u(ks[3], (4 * hidden_size,), k)              # bias_hh_l0
    W_fc = u(ks[4], (num_classes, hidden_size), k)      # fc.weight
    b_fc = u(ks[5], (num_classes,), k)                  # fc.bias
    return (W_ih, W_hh, b_ih, b_hh, W_fc, b_fc)


if __name__ == "__main__":
    # Small shapes consistent with the module: input_size=11*2=22, num_classes=2
    B, T, I, H, C = 2, 8, 22, 32, 2

    key = jax.random.PRNGKey(0)
    k_x, k_p = jax.random.split(key)
    x = jax.random.normal(k_x, (B, T, I), jnp.float32)
    params = init_params(k_p, I, H, C)

    ref = jax.block_until_ready(reference_forward(x, params))

    # f32 path (exact semantics of the PyTorch module).
    out = jax.block_until_ready(lstm_net_forward(x, params))
    assert out.shape == (B, C)
    assert jnp.allclose(out, ref, atol=1e-4, rtol=1e-4), (out, ref)

    # bf16 MXU-operand fast path (v6e/v7x); f32 state/accumulation preserved.
    out_bf16 = jax.block_until_ready(
        lstm_net_forward(x, params, matmul_dtype=jnp.bfloat16))
    assert out_bf16.shape == (B, C)
    assert bool(jnp.all(jnp.isfinite(out_bf16)))
    assert jnp.allclose(out_bf16, ref, atol=0.25, rtol=0.25)

    print("KERNEL_OK")
</pallas_src>

<mosaic_0001>
module attributes {stable_mosaic.version = 11 : i64} {
  func.func @lstm_net_kernel(%arg0: memref<64x22xf32, #tpu.memory_space<vmem>>, %arg1: memref<22x128xf32, #tpu.memory_space<vmem>>, %arg2: memref<32x128xf32, #tpu.memory_space<vmem>>, %arg3: memref<1x128xf32, #tpu.memory_space<vmem>>, %arg4: memref<32x2xf32, #tpu.memory_space<vmem>>, %arg5: memref<1x2xf32, #tpu.memory_space<vmem>>, %arg6: memref<2x2xf32, #tpu.memory_space<vmem>>) attributes {dimension_semantics = [], scalar_prefetch = 0 : i64, scratch_operands = 0 : i64, tpu.core_type = #tpu.core_type<tc>} {
    %c0 = arith.constant 0 : index
    %c0_0 = arith.constant 0 : index
    %0 = vector.load %arg0[%c0, %c0_0] : memref<64x22xf32, #tpu.memory_space<vmem>>, vector<64x22xf32>
    %c0_1 = arith.constant 0 : index
    %c0_2 = arith.constant 0 : index
    %1 = vector.load %arg1[%c0_1, %c0_2] : memref<22x128xf32, #tpu.memory_space<vmem>>, vector<22x128xf32>
    %cst = arith.constant dense<0.000000e+00> : vector<64x128xf32>
    %2 = tpu.matmul %0, %1, %cst {dimension_numbers = #tpu.dot_dimension_numbers<[1], [0], [0], [1], [0, 0, 1, 1], [], []>} : vector<64x22xf32>, vector<22x128xf32>, vector<64x128xf32> -> vector<64x128xf32>
    %c0_3 = arith.constant 0 : index
    %c0_4 = arith.constant 0 : index
    %3 = vector.load %arg3[%c0_3, %c0_4] : memref<1x128xf32, #tpu.memory_space<vmem>>, vector<1x128xf32>
    %4 = vector.broadcast %3 : vector<1x128xf32> to vector<64x128xf32>
    %5 = arith.addf %2, %4 : vector<64x128xf32>
    %c0_5 = arith.constant 0 : index
    %c0_6 = arith.constant 0 : index
    %6 = vector.load %arg2[%c0_5, %c0_6] : memref<32x128xf32, #tpu.memory_space<vmem>>, vector<32x128xf32>
    %cst_7 = arith.constant 0.000000e+00 : f32
    %7 = vector.broadcast %cst_7 : f32 to vector<8x32xf32>
    %cst_8 = arith.constant 0.000000e+00 : f32
    %8 = vector.broadcast %cst_8 : f32 to vector<8x32xf32>
    %9 = vector.extract_strided_slice %5 {offsets = [0, 0], sizes = [8, 128], strides = [1, 1]} : vector<64x128xf32> to vector<8x128xf32>
    %cst_9 = arith.constant dense<0.000000e+00> : vector<8x128xf32>
    %10 = tpu.matmul %7, %6, %cst_9 {dimension_numbers = #tpu.dot_dimension_numbers<[1], [0], [0], [1], [0, 0, 1, 1], [], []>} : vector<8x32xf32>, vector<32x128xf32>, vector<8x128xf32> -> vector<8x128xf32>
    %11 = arith.addf %9, %10 : vector<8x128xf32>
    %12 = arith.negf %11 : vector<8x128xf32>
    %13 = math.exp %12 : vector<8x128xf32>
    %cst_10 = arith.constant 1.000000e+00 : f32
    %14 = vector.broadcast %cst_10 : f32 to vector<8x128xf32>
    %15 = arith.addf %14, %13 : vector<8x128xf32>
    %16 = arith.divf %14, %15 : vector<8x128xf32>
    %17 = math.tanh %11 : vector<8x128xf32>
    %18 = vector.extract_strided_slice %16 {offsets = [0, 0], sizes = [8, 32], strides = [1, 1]} : vector<8x128xf32> to vector<8x32xf32>
    %19 = vector.extract_strided_slice %16 {offsets = [0, 32], sizes = [8, 32], strides = [1, 1]} : vector<8x128xf32> to vector<8x32xf32>
    %20 = vector.extract_strided_slice %17 {offsets = [0, 64], sizes = [8, 32], strides = [1, 1]} : vector<8x128xf32> to vector<8x32xf32>
    %21 = vector.extract_strided_slice %16 {offsets = [0, 96], sizes = [8, 32], strides = [1, 1]} : vector<8x128xf32> to vector<8x32xf32>
    %22 = arith.mulf %19, %8 : vector<8x32xf32>
    %23 = arith.mulf %18, %20 : vector<8x32xf32>
    %24 = arith.addf %22, %23 : vector<8x32xf32>
    %25 = math.tanh %24 : vector<8x32xf32>
    %26 = arith.mulf %21, %25 : vector<8x32xf32>
    %27 = vector.extract_strided_slice %5 {offsets = [8, 0], sizes = [8, 128], strides = [1, 1]} : vector<64x128xf32> to vector<8x128xf32>
    %cst_11 = arith.constant dense<0.000000e+00> : vector<8x128xf32>
    %28 = tpu.matmul %26, %6, %cst_11 {dimension_numbers = #tpu.dot_dimension_numbers<[1], [0], [0], [1], [0, 0, 1, 1], [], []>} : vector<8x32xf32>, vector<32x128xf32>, vector<8x128xf32> -> vector<8x128xf32>
    %29 = arith.addf %27, %28 : vector<8x128xf32>
    %30 = arith.negf %29 : vector<8x128xf32>
    %31 = math.exp %30 : vector<8x128xf32>
    %cst_12 = arith.constant 1.000000e+00 : f32
    %32 = vector.broadcast %cst_12 : f32 to vector<8x128xf32>
    %33 = arith.addf %32, %31 : vector<8x128xf32>
    %34 = arith.divf %32, %33 : vector<8x128xf32>
    %35 = math.tanh %29 : vector<8x128xf32>
    %36 = vector.extract_strided_slice %34 {offsets = [0, 0], sizes = [8, 32], strides = [1, 1]} : vector<8x128xf32> to vector<8x32xf32>
    %37 = vector.extract_strided_slice %34 {offsets = [0, 32], sizes = [8, 32], strides = [1, 1]} : vector<8x128xf32> to vector<8x32xf32>
    %38 = vector.extract_strided_slice %35 {offsets = [0, 64], sizes = [8, 32], strides = [1, 1]} : vector<8x128xf32> to vector<8x32xf32>
    %39 = vector.extract_strided_slice %34 {offsets = [0, 96], sizes = [8, 32], strides = [1, 1]} : vector<8x128xf32> to vector<8x32xf32>
    %40 = arith.mulf %37, %24 : vector<8x32xf32>
    %41 = arith.mulf %36, %38 : vector<8x32xf32>
    %42 = arith.addf %40, %41 : vector<8x32xf32>
    %43 = math.tanh %42 : vector<8x32xf32>
    %44 = arith.mulf %39, %43 : vector<8x32xf32>
    %45 = vector.extract_strided_slice %5 {offsets = [16, 0], sizes = [8, 128], strides = [1, 1]} : vector<64x128xf32> to vector<8x128xf32>
    %cst_13 = arith.constant dense<0.000000e+00> : vector<8x128xf32>
    %46 = tpu.matmul %44, %6, %cst_13 {dimension_numbers = #tpu.dot_dimension_numbers<[1], [0], [0], [1], [0, 0, 1, 1], [], []>} : vector<8x32xf32>, vector<32x128xf32>, vector<8x128xf32> -> vector<8x128xf32>
    %47 = arith.addf %45, %46 : vector<8x128xf32>
    %48 = arith.negf %47 : vector<8x128xf32>
    %49 = math.exp %48 : vector<8x128xf32>
    %cst_14 = arith.constant 1.000000e+00 : f32
    %50 = vector.broadcast %cst_14 : f32 to vector<8x128xf32>
    %51 = arith.addf %50, %49 : vector<8x128xf32>
    %52 = arith.divf %50, %51 : vector<8x128xf32>
    %53 = math.tanh %47 : vector<8x128xf32>
    %54 = vector.extract_strided_slice %52 {offsets = [0, 0], sizes = [8, 32], strides = [1, 1]} : vector<8x128xf32> to vector<8x32xf32>
    %55 = vector.extract_strided_slice %52 {offsets = [0, 32], sizes = [8, 32], strides = [1, 1]} : vector<8x128xf32> to vector<8x32xf32>
    %56 = vector.extract_strided_slice %53 {offsets = [0, 64], sizes = [8, 32], strides = [1, 1]} : vector<8x128xf32> to vector<8x32xf32>
    %57 = vector.extract_strided_slice %52 {offsets = [0, 96], sizes = [8, 32], strides = [1, 1]} : vector<8x128xf32> to vector<8x32xf32>
    %58 = arith.mulf %55, %42 : vector<8x32xf32>
    %59 = arith.mulf %54, %56 : vector<8x32xf32>
    %60 = arith.addf %58, %59 : vector<8x32xf32>
    %61 = math.tanh %60 : vector<8x32xf32>
    %62 = arith.mulf %57, %61 : vector<8x32xf32>
    %63 = vector.extract_strided_slice %5 {offsets = [24, 0], sizes = [8, 128], strides = [1, 1]} : vector<64x128xf32> to vector<8x128xf32>
    %cst_15 = arith.constant dense<0.000000e+00> : vector<8x128xf32>
    %64 = tpu.matmul %62, %6, %cst_15 {dimension_numbers = #tpu.dot_dimension_numbers<[1], [0], [0], [1], [0, 0, 1, 1], [], []>} : vector<8x32xf32>, vector<32x128xf32>, vector<8x128xf32> -> vector<8x128xf32>
    %65 = arith.addf %63, %64 : vector<8x128xf32>
    %66 = arith.negf %65 : vector<8x128xf32>
    %67 = math.exp %66 : vector<8x128xf32>
    %cst_16 = arith.constant 1.000000e+00 : f32
    %68 = vector.broadcast %cst_16 : f32 to vector<8x128xf32>
    %69 = arith.addf %68, %67 : vector<8x128xf32>
    %70 = arith.divf %68, %69 : vector<8x128xf32>
    %71 = math.tanh %65 : vector<8x128xf32>
    %72 = vector.extract_strided_slice %70 {offsets = [0, 0], sizes = [8, 32], strides = [1, 1]} : vector<8x128xf32> to vector<8x32xf32>
    %73 = vector.extract_strided_slice %70 {offsets = [0, 32], sizes = [8, 32], strides = [1, 1]} : vector<8x128xf32> to vector<8x32xf32>
    %74 = vector.extract_strided_slice %71 {offsets = [0, 64], sizes = [8, 32], strides = [1, 1]} : vector<8x128xf32> to vector<8x32xf32>
    %75 = vector.extract_strided_slice %70 {offsets = [0, 96], sizes = [8, 32], strides = [1, 1]} : vector<8x128xf32> to vector<8x32xf32>
    %76 = arith.mulf %73, %60 : vector<8x32xf32>
    %77 = arith.mulf %72, %74 : vector<8x32xf32>
    %78 = arith.addf %76, %77 : vector<8x32xf32>
    %79 = math.tanh %78 : vector<8x32xf32>
    %80 = arith.mulf %75, %79 : vector<8x32xf32>
    %81 = vector.extract_strided_slice %5 {offsets = [32, 0], sizes = [8, 128], strides = [1, 1]} : vector<64x128xf32> to vector<8x128xf32>
    %cst_17 = arith.constant dense<0.000000e+00> : vector<8x128xf32>
    %82 = tpu.matmul %80, %6, %cst_17 {dimension_numbers = #tpu.dot_dimension_numbers<[1], [0], [0], [1], [0, 0, 1, 1], [], []>} : vector<8x32xf32>, vector<32x128xf32>, vector<8x128xf32> -> vector<8x128xf32>
    %83 = arith.addf %81, %82 : vector<8x128xf32>
    %84 = arith.negf %83 : vector<8x128xf32>
    %85 = math.exp %84 : vector<8x128xf32>
    %cst_18 = arith.constant 1.000000e+00 : f32
    %86 = vector.broadcast %cst_18 : f32 to vector<8x128xf32>
    %87 = arith.addf %86, %85 : vector<8x128xf32>
    %88 = arith.divf %86, %87 : vector<8x128xf32>
    %89 = math.tanh %83 : vector<8x128xf32>
    %90 = vector.extract_strided_slice %88 {offsets = [0, 0], sizes = [8, 32], strides = [1, 1]} : vector<8x128xf32> to vector<8x32xf32>
    %91 = vector.extract_strided_slice %88 {offsets = [0, 32], sizes = [8, 32], strides = [1, 1]} : vector<8x128xf32> to vector<8x32xf32>
    %92 = vector.extract_strided_slice %89 {offsets = [0, 64], sizes = [8, 32], strides = [1, 1]} : vector<8x128xf32> to vector<8x32xf32>
    %93 = vector.extract_strided_slice %88 {offsets = [0, 96], sizes = [8, 32], strides = [1, 1]} : vector<8x128xf32> to vector<8x32xf32>
    %94 = arith.mulf %91, %78 : vector<8x32xf32>
    %95 = arith.mulf %90, %92 : vector<8x32xf32>
    %96 = arith.addf %94, %95 : vector<8x32xf32>
    %97 = math.tanh %96 : vector<8x32xf32>
    %98 = arith.mulf %93, %97 : vector<8x32xf32>
    %99 = vector.extract_strided_slice %5 {offsets = [40, 0], sizes = [8, 128], strides = [1, 1]} : vector<64x128xf32> to vector<8x128xf32>
    %cst_19 = arith.constant dense<0.000000e+00> : vector<8x128xf32>
    %100 = tpu.matmul %98, %6, %cst_19 {dimension_numbers = #tpu.dot_dimension_numbers<[1], [0], [0], [1], [0, 0, 1, 1], [], []>} : vector<8x32xf32>, vector<32x128xf32>, vector<8x128xf32> -> vector<8x128xf32>
    %101 = arith.addf %99, %100 : vector<8x128xf32>
    %102 = arith.negf %101 : vector<8x128xf32>
    %103 = math.exp %102 : vector<8x128xf32>
    %cst_20 = arith.constant 1.000000e+00 : f32
    %104 = vector.broadcast %cst_20 : f32 to vector<8x128xf32>
    %105 = arith.addf %104, %103 : vector<8x128xf32>
    %106 = arith.divf %104, %105 : vector<8x128xf32>
    %107 = math.tanh %101 : vector<8x128xf32>
    %108 = vector.extract_strided_slice %106 {offsets = [0, 0], sizes = [8, 32], strides = [1, 1]} : vector<8x128xf32> to vector<8x32xf32>
    %109 = vector.extract_strided_slice %106 {offsets = [0, 32], sizes = [8, 32], strides = [1, 1]} : vector<8x128xf32> to vector<8x32xf32>
    %110 = vector.extract_strided_slice %107 {offsets = [0, 64], sizes = [8, 32], strides = [1, 1]} : vector<8x128xf32> to vector<8x32xf32>
    %111 = vector.extract_strided_slice %106 {offsets = [0, 96], sizes = [8, 32], strides = [1, 1]} : vector<8x128xf32> to vector<8x32xf32>
    %112 = arith.mulf %109, %96 : vector<8x32xf32>
    %113 = arith.mulf %108, %110 : vector<8x32xf32>
    %114 = arith.addf %112, %113 : vector<8x32xf32>
    %115 = math.tanh %114 : vector<8x32xf32>
    %116 = arith.mulf %111, %115 : vector<8x32xf32>
    %117 = vector.extract_strided_slice %5 {offsets = [48, 0], sizes = [8, 128], strides = [1, 1]} : vector<64x128xf32> to vector<8x128xf32>
    %cst_21 = arith.constant dense<0.000000e+00> : vector<8x128xf32>
    %118 = tpu.matmul %116, %6, %cst_21 {dimension_numbers = #tpu.dot_dimension_numbers<[1], [0], [0], [1], [0, 0, 1, 1], [], []>} : vector<8x32xf32>, vector<32x128xf32>, vector<8x128xf32> -> vector<8x128xf32>
    %119 = arith.addf %117, %118 : vector<8x128xf32>
    %120 = arith.negf %119 : vector<8x128xf32>
    %121 = math.exp %120 : vector<8x128xf32>
    %cst_22 = arith.constant 1.000000e+00 : f32
    %122 = vector.broadcast %cst_22 : f32 to vector<8x128xf32>
    %123 = arith.addf %122, %121 : vector<8x128xf32>
    %124 = arith.divf %122, %123 : vector<8x128xf32>
    %125 = math.tanh %119 : vector<8x128xf32>
    %126 = vector.extract_strided_slice %124 {offsets = [0, 0], sizes = [8, 32], strides = [1, 1]} : vector<8x128xf32> to vector<8x32xf32>
    %127 = vector.extract_strided_slice %124 {offsets = [0, 32], sizes = [8, 32], strides = [1, 1]} : vector<8x128xf32> to vector<8x32xf32>
    %128 = vector.extract_strided_slice %125 {offsets = [0, 64], sizes = [8, 32], strides = [1, 1]} : vector<8x128xf32> to vector<8x32xf32>
    %129 = vector.extract_strided_slice %124 {offsets = [0, 96], sizes = [8, 32], strides = [1, 1]} : vector<8x128xf32> to vector<8x32xf32>
    %130 = arith.mulf %127, %114 : vector<8x32xf32>
    %131 = arith.mulf %126, %128 : vector<8x32xf32>
    %132 = arith.addf %130, %131 : vector<8x32xf32>
    %133 = math.tanh %132 : vector<8x32xf32>
    %134 = arith.mulf %129, %133 : vector<8x32xf32>
    %135 = vector.extract_strided_slice %5 {offsets = [56, 0], sizes = [8, 128], strides = [1, 1]} : vector<64x128xf32> to vector<8x128xf32>
    %cst_23 = arith.constant dense<0.000000e+00> : vector<8x128xf32>
    %136 = tpu.matmul %134, %6, %cst_23 {dimension_numbers = #tpu.dot_dimension_numbers<[1], [0], [0], [1], [0, 0, 1, 1], [], []>} : vector<8x32xf32>, vector<32x128xf32>, vector<8x128xf32> -> vector<8x128xf32>
    %137 = arith.addf %135, %136 : vector<8x128xf32>
    %138 = arith.negf %137 : vector<8x128xf32>
    %139 = math.exp %138 : vector<8x128xf32>
    %cst_24 = arith.constant 1.000000e+00 : f32
    %140 = vector.broadcast %cst_24 : f32 to vector<8x128xf32>
    %141 = arith.addf %140, %139 : vector<8x128xf32>
    %142 = arith.divf %140, %141 : vector<8x128xf32>
    %143 = math.tanh %137 : vector<8x128xf32>
    %144 = vector.extract_strided_slice %142 {offsets = [0, 0], sizes = [8, 32], strides = [1, 1]} : vector<8x128xf32> to vector<8x32xf32>
    %145 = vector.extract_strided_slice %142 {offsets = [0, 32], sizes = [8, 32], strides = [1, 1]} : vector<8x128xf32> to vector<8x32xf32>
    %146 = vector.extract_strided_slice %143 {offsets = [0, 64], sizes = [8, 32], strides = [1, 1]} : vector<8x128xf32> to vector<8x32xf32>
    %147 = vector.extract_strided_slice %142 {offsets = [0, 96], sizes = [8, 32], strides = [1, 1]} : vector<8x128xf32> to vector<8x32xf32>
    %148 = arith.mulf %145, %132 : vector<8x32xf32>
    %149 = arith.mulf %144, %146 : vector<8x32xf32>
    %150 = arith.addf %148, %149 : vector<8x32xf32>
    %151 = math.tanh %150 : vector<8x32xf32>
    %152 = arith.mulf %147, %151 : vector<8x32xf32>
    %c0_25 = arith.constant 0 : index
    %c0_26 = arith.constant 0 : index
    %153 = vector.load %arg4[%c0_25, %c0_26] : memref<32x2xf32, #tpu.memory_space<vmem>>, vector<32x2xf32>
    %cst_27 = arith.constant dense<0.000000e+00> : vector<8x2xf32>
    %154 = tpu.matmul %152, %153, %cst_27 {dimension_numbers = #tpu.dot_dimension_numbers<[1], [0], [0], [1], [0, 0, 1, 1], [], []>} : vector<8x32xf32>, vector<32x2xf32>, vector<8x2xf32> -> vector<8x2xf32>
    %c0_28 = arith.constant 0 : index
    %c0_29 = arith.constant 0 : index
    %155 = vector.load %arg5[%c0_28, %c0_29] : memref<1x2xf32, #tpu.memory_space<vmem>>, vector<1x2xf32>
    %156 = vector.broadcast %155 : vector<1x2xf32> to vector<8x2xf32>
    %157 = arith.addf %154, %156 : vector<8x2xf32>
    %158 = vector.extract_strided_slice %157 {offsets = [0, 0], sizes = [2, 2], strides = [1, 1]} : vector<8x2xf32> to vector<2x2xf32>
    %c0_30 = arith.constant 0 : index
    %c0_31 = arith.constant 0 : index
    %159 = vector.load %arg6[%c0_30, %c0_31] : memref<2x2xf32, #tpu.memory_space<vmem>>, vector<2x2xf32>
    tpu.vector_store %arg6[%c0_30, %c0_31], %158 {strides = array<i32>} : memref<2x2xf32, #tpu.memory_space<vmem>>, vector<2x2xf32>,
    return
  }
}

</mosaic_0001>

<bundles_post_ra>
// kernel: tpu_custom_call.1
= control target key start
LH: loop header
LB: loop body
LE: loop exit
PB: predicated region body
PF: predicated region fallthrough
CT: control target
= control target key end

     0   :  { %vm67_vm0 = vcmask 1045504   ;;  %v1372_v3 = vmov 0.0   ;;  %vm42_vm1 = vcmask 179200   ;;  %s1643_s0 = inlined_call_operand.vmem [shape: f32[64,22], index: 0, kind: input, shape index: {}]   ;;  %s1644_s1 = inlined_call_operand.vmem [shape: f32[22,128], index: 1, kind: input, shape index: {}]   ;;  %s1645_s2 = inlined_call_operand.vmem [shape: f32[32,128], index: 2, kind: input, shape index: {}]   ;;  %s1646_s3 = inlined_call_operand.vmem [shape: f32[1,128], index: 3, kind: input, shape index: {}]   ;;  %s1647_s4 = inlined_call_operand.vmem [shape: f32[32,2], index: 4, kind: input, shape index: {}]   ;;  %s1648_s5 = inlined_call_operand.vmem [shape: f32[1,2], index: 5, kind: input, shape index: {}]   ;;  %s1649_s6 = inlined_call_operand.hbm [shape: f32[2,2], index: 6, kind: output, shape index: {}]  }
   0x1   :  { %v34_v0 = vld [vmem:[%s1644_s1 + $0x10] sm:$0x3f]  ;;  %v1418_v1 = vld [vmem:[%s1645_s2 + $0x18] sm:$0xff]  ;;  %v33_v2 = vld [vmem:[%s1644_s1 + $0x8] sm:$0xff]  ;;  %1182 = vmatprep.subr.mxu1 %v1372_v3 }
   0x2   :  { %1164 = vmatprep.subr.msk.mxu0 %vm67_vm0, %v34_v0  ;;  %v1427_v4 = vld [vmem:[%s1645_s2 + $0x10] sm:$0xff]  ;;  %1183 = vmatpush3.msra.mxu1 %v1418_v1  ;;  %v32_v5 = vld [vmem:[%s1644_s1] sm:$0xff] }
   0x3   :  { %1165 = vmatpush3.msk.msra.mxu0 %vm67_vm0, %v34_v0  ;;  %1184 = vmatprep.subr.mxu1 %v1372_v3  ;;  %v24_v6 = vld [vmem:[%s1643_s0] sm:$0xff] }
   0x4   :  { %1166 = vmatprep.subr.mxu0 %v33_v2 }
   0x5   :  { %11 = vsyncpa [#allocation3], 0  ;;  %1167 = vmatpush3.msra.mxu0 %v33_v2  ;;  %1185 = vmatpush3.msra.mxu1 %v1427_v4  ;;  %v1441_v7 = vld [vmem:[%s1645_s2 + $0x8] sm:$0xff]  ;;  %v1451_v9 = vld [vmem:[%s1645_s2] sm:$0xff]  ;;  %vm1373_vm2 = vmmov 0   ;;  %s1374_s15 = smov 64  }
   0x6   :  { %v25_v8 = vld [vmem:[%s1643_s0 + $0x8] sm:$0xff]  ;;  %1168 = vmatprep.subr.mxu0 %v32_v5  ;;  %1186 = vmatprep.subr.mxu1 %v1372_v3  ;;  %v1483_v11 = vld [vmem:[%s1646_s3] ss:$0 sm:$0xff]  ;;  %s1375_s3 = smov 32   ;;  %vm180_vm3 = vcmask 261120   ;;  %v26_v45 = vld [vmem:[%s1643_s0 + $0x10] sm:$0xff] }
   0x7   :  { %1169 = vmatpush3.msra.mxu0 %v32_v5  ;;  %1170 = vmatprep.mubr.msk.f32.mxu0 %vm42_vm1, %v24_v6  ;;  %v27_v46 = vld [vmem:[%s1643_s0 + $0x18] sm:$0xff]  ;;  %v28_v47 = vld [vmem:[%s1643_s0 + $0x20] sm:$0xff]  ;;  %v29_v48 = vld [vmem:[%s1643_s0 + $0x28] sm:$0xff]  ;;  %s1376_s1 = smov [#allocation2]   ;;  %vm1065_vm4 = vcmask 9216  }
   0x8   :  { %1187 = vmatpush3.msra.mxu1 %v1441_v7  ;;  %1171 = vmatmul.mubr.msk.f32.vlgmr.msra.gmra.mxu0 %vm42_vm1, %v25_v8  ;;  %v30_v49 = vld [vmem:[%s1643_s0 + $0x30] sm:$0xff]  ;;  %v31_v50 = vld [vmem:[%s1643_s0 + $0x38] sm:$0xff] }
   0x9   :  { %1188 = vmatprep.subr.mxu1 %v1372_v3  ;;  %1190 = vmatprep.mubr.msk.f32.mxu1 %vm1373_vm2, %v1372_v3 }
   0xa   :  { %1189 = vmatpush3.msra.mxu1 %v1451_v9  ;;  %1204 = vmatprep.subr.mxu0 %v1372_v3 }
   0xb   :  { %1191 = vmatmul.mubr.f32.vlgmr.msra.gmra.mxu1 %v1372_v3  ;;  %1193 = vmatprep.subr.mxu1 %v1372_v3 }
   0xc   :  { %1194 = vmatpush3.msra.mxu1 %v1418_v1  ;;  %1201 = vmatprep.mubr.msk.f32.mxu1 %vm1373_vm2, %v1372_v3 }
   0xd   :  { %1195 = vmatprep.subr.mxu1 %v1372_v3  ;;  %1205 = vmatpush3.msra.mxu0 %v1418_v1 }
   0xe   :  { %1196 = vmatpush3.msra.mxu1 %v1427_v4  ;;  %1206 = vmatprep.subr.mxu0 %v1372_v3 }
   0xf   :  { %1197 = vmatprep.subr.mxu1 %v1372_v3  ;;  %1207 = vmatpush3.msra.mxu0 %v1427_v4 }
  0x10   :  { %1198 = vmatpush3.msra.mxu1 %v1441_v7  ;;  %1208 = vmatprep.subr.mxu0 %v1372_v3 }
  0x11   :  { %1199 = vmatprep.subr.mxu1 %v1372_v3  ;;  %1209 = vmatpush3.msra.mxu0 %v1441_v7 }
  0x12   :  { %1200 = vmatpush3.msra.mxu1 %v1451_v9  ;;  %1210 = vmatprep.subr.mxu0 %v1372_v3 }
  0x13   :  { %1211 = vmatpush3.msra.mxu0 %v1451_v9  ;;  %1215 = vmatprep.subr.mxu1 %v1372_v3 }
  0x14   :  { %1226 = vmatprep.subr.mxu0 %v1372_v3  ;;  %1173 = vmatprep.mubr.msk.f32.mxu0 %vm42_vm1, %v26_v45 }
  0x15   :  { %1174 = vmatmul.mubr.msk.f32.gmra.mxu0 %vm42_vm1, %v27_v46 }
  0x16   :  { %1176 = vmatprep.mubr.msk.f32.mxu0 %vm42_vm1, %v28_v47 }
  0x19   :  { %1177 = vmatmul.mubr.msk.f32.gmra.mxu0 %vm42_vm1, %v29_v48 }
  0x1a   :  { %1179 = vmatprep.mubr.msk.f32.mxu0 %vm42_vm1, %v30_v49 }
  0x1d   :  { %1180 = vmatmul.mubr.msk.f32.gmra.mxu0 %vm42_vm1, %v31_v50 }
  0x1e   :  { %1212 = vmatprep.mubr.msk.f32.mxu0 %vm1373_vm2, %v1372_v3 }
  0xc8   :  { %v1172_v10 = vpop.f32.mrf.mxu0 }
  0xc9   :  { %v143_v31 = vadd.f32 %v1172_v10, %v1483_v11 }
  0xca   :  { %v137_v12 = vpop.f32.mrf.mxu0 }
  0xcb   :  { %v138_v13 = vadd.f32 %v1483_v11, %v137_v12  ;;  %v250_v14 = vpop.f32.mrf.mxu1 }
  0xcd   :  { %v254_v15 = vadd.f32 %v250_v14, %v138_v13  ;;  %v1192_v16 = vpop.f32.mrf.mxu1 }
  0xcf   :  { %1286 = vtanh.f32 %v254_v15  ;;  %v1091_v18 = vmul.f32 -1.442695, %v254_v15 }
  0xd1   :  { %1288 = vpow2.f32 %v1091_v18 }
  0xd5   :  { %v1175_v55 = vpop.f32.mrf.mxu0 }
  0xd7   :  { %v147_v56 = vpop.f32.mrf.mxu0 }
  0xd8   :  { %v148_v61 = vadd.f32 %v1483_v11, %v147_v56 }
  0xd9   :  { %v1543_v57 = vpop.f32.mrf.mxu0 }
  0xdb   :  { %v1545_v58 = vpop.f32.mrf.mxu0 }
  0xdc   :  { %v1287_v17 = vpop.eup %1286 }
  0xdd   :  { %264 = vrot.lane.b32.xlu0 %v1287_v17, %s1374_s15  ;;  %v1547_v59 = vpop.f32.mrf.mxu0 }
  0xde   :  { %v1289_v19 = vpop.eup %1288 }
  0xdf   :  { %v258_v20 = vadd.f32 1.0, %v1289_v19  ;;  %v1549_v60 = vpop.f32.mrf.mxu0 }
  0xe1   :  { %1290 = vrcp.f32 %v258_v20 }
  0xee   :  { %v1291_v21 = vpop.eup %1290 }
  0xef   :  { %v262_v24 = vmul.f32 0.0, %v1291_v21 }
 0x14f   :  { %v265_v22 = vpop.permute.xlu0 %264 }
 0x150   :  { %v267_v23 = vmul.f32 %v1291_v21, %v265_v22 }
 0x152   :  { %269 = vrot.lane.b32.xlu0 %v267_v23, %s1375_s3 }
 0x1c4   :  { %v270_v25 = vpop.permute.xlu0 %269 }
 0x1c5   :  { %v272_v26 = vadd.f32 %v270_v25, %v262_v24 }
 0x1c7   :  { %1292 = vtanh.f32 %v272_v26 }
 0x1d4   :  { %v1293_v27 = vpop.eup %1292 }
 0x1d5   :  { %275 = vrot.lane.b32.xlu1 %v1293_v27, %s1374_s15 }
 0x247   :  { %v276_v28 = vpop.permute.xlu1 %275 }
 0x248   :  { %v278_v29 = vmul.f32 %v1291_v21, %v276_v28  ;;  %v153_v21 = vadd.f32 %v1175_v55, %v1483_v11 }
 0x24a   :  { %280 = vrot.lane.b32.xlu1 %v278_v29, %s1375_s3 }
 0x2bc   :  { %v281_v30 = vpop.permute.xlu1 %280 }
 0x2bd   :  { %1202 = vmatmul.mubr.msk.f32.vlgmr.msra.gmra.mxu1 %vm180_vm3, %v281_v30 }
 0x2be   :  { %1216 = vmatpush3.msra.mxu1 %v1418_v1  ;;  %1223 = vmatprep.mubr.msk.f32.mxu1 %vm1373_vm2, %v1372_v3 }
 0x2bf   :  { %1217 = vmatprep.subr.mxu1 %v1372_v3 }
 0x2c0   :  { %1218 = vmatpush3.msra.mxu1 %v1427_v4 }
 0x2c1   :  { %1219 = vmatprep.subr.mxu1 %v1372_v3 }
 0x2c2   :  { %1220 = vmatpush3.msra.mxu1 %v1441_v7 }
 0x2c3   :  { %1221 = vmatprep.subr.mxu1 %v1372_v3 }
 0x2c4   :  { %1222 = vmatpush3.msra.mxu1 %v1451_v9 }
 0x2c5   :  { %1237 = vmatprep.subr.mxu1 %v1372_v3 }
 0x37d   :  { %v350_v32 = vpop.f32.mrf.mxu1 }
 0x37e   :  { %v354_v33 = vadd.f32 %v350_v32, %v143_v31 }
 0x37f   :  { %v1203_v34 = vpop.f32.mrf.mxu1 }
 0x380   :  { %1294 = vtanh.f32 %v354_v33  ;;  %v1093_v36 = vmul.f32 -1.442695, %v354_v33 }
 0x382   :  { %1296 = vpow2.f32 %v1093_v36 }
 0x38d   :  { %v1295_v35 = vpop.eup %1294 }
 0x38e   :  { %364 = vrot.lane.b32.xlu0 %v1295_v35, %s1374_s15 }
 0x38f   :  { %v1297_v37 = vpop.eup %1296 }
 0x390   :  { %v358_v38 = vadd.f32 1.0, %v1297_v37 }
 0x392   :  { %1298 = vrcp.f32 %v358_v38 }
 0x39f   :  { %v1299_v39 = vpop.eup %1298 }
 0x3a0   :  { %v362_v42 = vmul.f32 %v1299_v39, %v272_v26 }
 0x400   :  { %v365_v40 = vpop.permute.xlu0 %364 }
 0x401   :  { %v367_v41 = vmul.f32 %v1299_v39, %v365_v40 }
 0x403   :  { %369 = vrot.lane.b32.xlu1 %v367_v41, %s1375_s3 }
 0x475   :  { %v370_v43 = vpop.permute.xlu1 %369 }
 0x476   :  { %v372_v44 = vadd.f32 %v370_v43, %v362_v42 }
 0x478   :  { %1300 = vtanh.f32 %v372_v44 }
 0x485   :  { %v1301_v51 = vpop.eup %1300 }
 0x486   :  { %375 = vrot.lane.b32.xlu0 %v1301_v51, %s1374_s15 }
 0x4f8   :  { %v376_v52 = vpop.permute.xlu0 %375 }
 0x4f9   :  { %v378_v53 = vmul.f32 %v1299_v39, %v376_v52  ;;  %v158_v39 = vadd.f32 %v1483_v11, %v1545_v58  ;;  %v163_v58 = vadd.f32 %v1543_v57, %v1483_v11 }
 0x4fb   :  { %380 = vrot.lane.b32.xlu1 %v378_v53, %s1375_s3 }
 0x56d   :  { %v381_v54 = vpop.permute.xlu1 %380 }
 0x56e   :  { %1213 = vmatmul.mubr.msk.f32.vlgmr.msra.gmra.mxu0 %vm180_vm3, %v381_v54 }
 0x56f   :  { %1227 = vmatpush3.msra.mxu0 %v1418_v1  ;;  %1234 = vmatprep.mubr.msk.f32.mxu0 %vm1373_vm2, %v1372_v3 }
 0x570   :  { %1228 = vmatprep.subr.mxu0 %v1372_v3 }
 0x571   :  { %1229 = vmatpush3.msra.mxu0 %v1427_v4 }
 0x572   :  { %1230 = vmatprep.subr.mxu0 %v1372_v3 }
 0x573   :  { %1231 = vmatpush3.msra.mxu0 %v1441_v7 }
 0x574   :  { %1232 = vmatprep.subr.mxu0 %v1372_v3 }
 0x575   :  { %1233 = vmatpush3.msra.mxu0 %v1451_v9 }
 0x576   :  { %1248 = vmatprep.subr.mxu0 %v1372_v3 }
 0x62e   :  { %v450_v62 = vpop.f32.mrf.mxu0 }
 0x62f   :  { %v454_v63 = vadd.f32 %v450_v62, %v148_v61 }
 0x630   :  { %v1214_v0 = vpop.f32.mrf.mxu0 }
 0x631   :  { %1302 = vtanh.f32 %v454_v63  ;;  %v1095_v5 = vmul.f32 -1.442695, %v454_v63 }
 0x633   :  { %1304 = vpow2.f32 %v1095_v5 }
 0x63e   :  { %v1303_v2 = vpop.eup %1302 }
 0x63f   :  { %464 = vrot.lane.b32.xlu0 %v1303_v2, %s1374_s15 }
 0x640   :  { %v1305_v6 = vpop.eup %1304 }
 0x641   :  { %v458_v8 = vadd.f32 1.0, %v1305_v6 }
 0x643   :  { %1306 = vrcp.f32 %v458_v8 }
 0x650   :  { %v1307_v10 = vpop.eup %1306 }
 0x651   :  { %v462_v14 = vmul.f32 %v1307_v10, %v372_v44 }
 0x6b1   :  { %v465_v12 = vpop.permute.xlu0 %464 }
 0x6b2   :  { %v467_v13 = vmul.f32 %v1307_v10, %v465_v12 }
 0x6b4   :  { %469 = vrot.lane.b32.xlu1 %v467_v13, %s1375_s3 }
 0x726   :  { %v470_v15 = vpop.permute.xlu1 %469 }
 0x727   :  { %v472_v16 = vadd.f32 %v470_v15, %v462_v14  ;;  %v168_v15 = vadd.f32 %v1483_v11, %v1549_v60 }
 0x729   :  { %1308 = vtanh.f32 %v472_v16 }
 0x736   :  { %v1309_v17 = vpop.eup %1308 }
 0x737   :  { %475 = vrot.lane.b32.xlu0 %v1309_v17, %s1374_s15 }
 0x7a9   :  { %v476_v18 = vpop.permute.xlu0 %475 }
 0x7aa   :  { %v478_v19 = vmul.f32 %v1307_v10, %v476_v18 }
 0x7ac   :  { %480 = vrot.lane.b32.xlu1 %v478_v19, %s1375_s3 }
 0x81e   :  { %v481_v20 = vpop.permute.xlu1 %480 }
 0x81f   :  { %1224 = vmatmul.mubr.msk.f32.vlgmr.msra.gmra.mxu1 %vm180_vm3, %v481_v20 }
 0x820   :  { %1238 = vmatpush3.msra.mxu1 %v1418_v1  ;;  %1245 = vmatprep.mubr.msk.f32.mxu1 %vm1373_vm2, %v1372_v3 }
 0x821   :  { %1239 = vmatprep.subr.mxu1 %v1372_v3 }
 0x822   :  { %1240 = vmatpush3.msra.mxu1 %v1427_v4 }
 0x823   :  { %1241 = vmatprep.subr.mxu1 %v1372_v3 }
 0x824   :  { %1242 = vmatpush3.msra.mxu1 %v1441_v7 }
 0x825   :  { %1243 = vmatprep.subr.mxu1 %v1372_v3 }
 0x826   :  { %1244 = vmatpush3.msra.mxu1 %v1451_v9 }
 0x827   :  { %1259 = vmatprep.subr.mxu1 %v1372_v3 }
 0x8df   :  { %v550_v22 = vpop.f32.mrf.mxu1 }
 0x8e0   :  { %v554_v23 = vadd.f32 %v550_v22, %v153_v21 }
 0x8e1   :  { %v1225_v24 = vpop.f32.mrf.mxu1 }
 0x8e2   :  { %1310 = vtanh.f32 %v554_v23  ;;  %v1097_v26 = vmul.f32 -1.442695, %v554_v23 }
 0x8e4   :  { %1312 = vpow2.f32 %v1097_v26 }
 0x8ef   :  { %v1311_v25 = vpop.eup %1310 }
 0x8f0   :  { %564 = vrot.lane.b32.xlu0 %v1311_v25, %s1374_s15 }
 0x8f1   :  { %v1313_v27 = vpop.eup %1312 }
 0x8f2   :  { %v558_v28 = vadd.f32 1.0, %v1313_v27 }
 0x8f4   :  { %1314 = vrcp.f32 %v558_v28 }
 0x901   :  { %v1315_v29 = vpop.eup %1314 }
 0x902   :  { %v562_v32 = vmul.f32 %v1315_v29, %v472_v16 }
 0x962   :  { %v565_v30 = vpop.permute.xlu0 %564 }
 0x963   :  { %v567_v31 = vmul.f32 %v1315_v29, %v565_v30 }
 0x965   :  { %569 = vrot.lane.b32.xlu1 %v567_v31, %s1375_s3 }
 0x9d7   :  { %v570_v33 = vpop.permute.xlu1 %569 }
 0x9d8   :  { %v572_v34 = vadd.f32 %v570_v33, %v562_v32  ;;  %v173_v32 = vadd.f32 %v1547_v59, %v1483_v11  ;;  %v982_v59 = vld [vmem:[%s1647_s4 + $0x18] sm:$0xff] }
 0x9da   :  { %1316 = vtanh.f32 %v572_v34 }
 0x9e7   :  { %v1317_v35 = vpop.eup %1316 }
 0x9e8   :  { %575 = vrot.lane.b32.xlu0 %v1317_v35, %s1374_s15 }
 0xa5a   :  { %v576_v36 = vpop.permute.xlu0 %575 }
 0xa5b   :  { %v578_v37 = vmul.f32 %v1315_v29, %v576_v36 }
 0xa5d   :  { %580 = vrot.lane.b32.xlu1 %v578_v37, %s1375_s3 }
 0xacf   :  { %v581_v38 = vpop.permute.xlu1 %580 }
 0xad0   :  { %1235 = vmatmul.mubr.msk.f32.vlgmr.msra.gmra.mxu0 %vm180_vm3, %v581_v38 }
 0xad1   :  { %1249 = vmatpush3.msra.mxu0 %v1418_v1  ;;  %1256 = vmatprep.mubr.msk.f32.mxu0 %vm1373_vm2, %v1372_v3 }
 0xad2   :  { %1250 = vmatprep.subr.mxu0 %v1372_v3 }
 0xad3   :  { %1251 = vmatpush3.msra.mxu0 %v1427_v4 }
 0xad4   :  { %1252 = vmatprep.subr.mxu0 %v1372_v3 }
 0xad5   :  { %1253 = vmatpush3.msra.mxu0 %v1441_v7 }
 0xad6   :  { %1254 = vmatprep.subr.mxu0 %v1372_v3 }
 0xad7   :  { %1255 = vmatpush3.msra.mxu0 %v1451_v9 }
 0xad8   :  { %1270 = vmatprep.subr.mxu0 %v1372_v3 }
 0xb90   :  { %v650_v40 = vpop.f32.mrf.mxu0 }
 0xb91   :  { %v654_v41 = vadd.f32 %v650_v40, %v158_v39 }
 0xb92   :  { %v1236_v42 = vpop.f32.mrf.mxu0 }
 0xb93   :  { %1318 = vtanh.f32 %v654_v41  ;;  %v1099_v44 = vmul.f32 -1.442695, %v654_v41 }
 0xb95   :  { %1320 = vpow2.f32 %v1099_v44 }
 0xba0   :  { %v1319_v43 = vpop.eup %1318 }
 0xba1   :  { %664 = vrot.lane.b32.xlu0 %v1319_v43, %s1374_s15 }
 0xba2   :  { %v1321_v45 = vpop.eup %1320 }
 0xba3   :  { %v658_v46 = vadd.f32 1.0, %v1321_v45  ;;  %v981_v45 = vld [vmem:[%s1647_s4 + $0x10] sm:$0xff] }
 0xba5   :  { %1322 = vrcp.f32 %v658_v46  ;;  %v980_v46 = vld [vmem:[%s1647_s4 + $0x8] sm:$0xff] }
 0xbb2   :  { %v1323_v47 = vpop.eup %1322 }
 0xbb3   :  { %v662_v50 = vmul.f32 %v1323_v47, %v572_v34 }
 0xc13   :  { %v665_v48 = vpop.permute.xlu0 %664 }
 0xc14   :  { %v667_v49 = vmul.f32 %v1323_v47, %v665_v48 }
 0xc16   :  { %669 = vrot.lane.b32.xlu1 %v667_v49, %s1375_s3 }
 0xc88   :  { %v670_v51 = vpop.permute.xlu1 %669 }
 0xc89   :  { %v672_v52 = vadd.f32 %v670_v51, %v662_v50 }
 0xc8b   :  { %1324 = vtanh.f32 %v672_v52 }
 0xc98   :  { %v1325_v53 = vpop.eup %1324 }
 0xc99   :  { %675 = vrot.lane.b32.xlu0 %v1325_v53, %s1374_s15 }
 0xd0b   :  { %v676_v54 = vpop.permute.xlu0 %675 }
 0xd0c   :  { %v678_v55 = vmul.f32 %v1323_v47, %v676_v54  ;;  %v979_v47 = vld [vmem:[%s1647_s4] sm:$0xff]  ;;  %s1073_s4 = sshll.u32 %s1376_s1, 4  ;;  %s1074_s4 = int_to_ptr.vmem [resolvable:$true] %s1073_s4 }
 0xd0d   :  { %s1350_s13 = scalar_lea.vmem %s1074_s4, 32  ;;  %p1355_p1 = scmp.lt.s32.totalorder %s1074_s4, %s1074_s4 }
 0xd0e   :  { %680 = vrot.lane.b32.xlu1 %v678_v55, %s1375_s3  ;;  %p1351_p0 = scmp.ne.s32.totalorder %s1074_s4, %s1350_s13  ;;  %p1356_p2 = scmp.lt.s32.totalorder %s1350_s13, %s1350_s13 }
 0xd10   :  { %p1357_p3 = por %p1356_p2, %p1355_p1 }
 0xd12   :  { %p1358_p4 = pnand %p1357_p3, %p1351_p0 }
 0xd80   :  { %v681_v56 = vpop.permute.xlu1 %680 }
 0xd81   :  { %1246 = vmatmul.mubr.msk.f32.vlgmr.msra.gmra.mxu1 %vm180_vm3, %v681_v56 }
 0xd82   :  { %1260 = vmatpush3.msra.mxu1 %v1418_v1  ;;  %1267 = vmatprep.mubr.msk.f32.mxu1 %vm1373_vm2, %v1372_v3 }
 0xd83   :  { %1261 = vmatprep.subr.mxu1 %v1372_v3 }
 0xd84   :  { %1262 = vmatpush3.msra.mxu1 %v1427_v4 }
 0xd85   :  { %1263 = vmatprep.subr.mxu1 %v1372_v3 }
 0xd86   :  { %1264 = vmatpush3.msra.mxu1 %v1441_v7 }
 0xd87   :  { %1265 = vmatprep.subr.mxu1 %v1372_v3 }
 0xd88   :  { %1266 = vmatpush3.msra.mxu1 %v1451_v9 }
 0xe41   :  { %v750_v61 = vpop.f32.mrf.mxu1 }
 0xe42   :  { %v754_v1 = vadd.f32 %v750_v61, %v163_v58 }
 0xe43   :  { %v1247_v62 = vpop.f32.mrf.mxu1 }
 0xe44   :  { %1326 = vtanh.f32 %v754_v1  ;;  %v1101_v0 = vmul.f32 -1.442695, %v754_v1 }
 0xe46   :  { %1328 = vpow2.f32 %v1101_v0 }
 0xe51   :  { %v1327_v63 = vpop.eup %1326 }
 0xe52   :  { %764 = vrot.lane.b32.xlu0 %v1327_v63, %s1374_s15 }
 0xe53   :  { %v1329_v4 = vpop.eup %1328 }
 0xe54   :  { %v758_v2 = vadd.f32 1.0, %v1329_v4 }
 0xe56   :  { %1330 = vrcp.f32 %v758_v2 }
 0xe63   :  { %v1331_v7 = vpop.eup %1330 }
 0xe64   :  { %v762_v9 = vmul.f32 %v1331_v7, %v672_v52  ;;  %v1106_v52 = vld [vmem:[%s1648_s5] ss:$0 sm:$0xff] }
 0xec4   :  { %v765_v5 = vpop.permute.xlu0 %764 }
 0xec5   :  { %v767_v6 = vmul.f32 %v1331_v7, %v765_v5 }
 0xec7   :  { %769 = vrot.lane.b32.xlu1 %v767_v6, %s1375_s3 }
 0xf39   :  { %v770_v8 = vpop.permute.xlu1 %769 }
 0xf3a   :  { %v772_v57 = vadd.f32 %v770_v8, %v762_v9 }
 0xf3c   :  { %1332 = vtanh.f32 %v772_v57 }
 0xf49   :  { %v1333_v10 = vpop.eup %1332 }
 0xf4a   :  { %775 = vrot.lane.b32.xlu0 %v1333_v10, %s1374_s15 }
 0xfbc   :  { %v776_v12 = vpop.permute.xlu0 %775 }
 0xfbd   :  { %v778_v13 = vmul.f32 %v1331_v7, %v776_v12 }
 0xfbf   :  { %780 = vrot.lane.b32.xlu1 %v778_v13, %s1375_s3 }
0x1031   :  { %v781_v14 = vpop.permute.xlu1 %780 }
0x1032   :  { %1257 = vmatmul.mubr.msk.f32.vlgmr.msra.gmra.mxu0 %vm180_vm3, %v781_v14 }
0x1033   :  { %1278 = vmatprep.mubr.msk.f32.mxu0 %vm1373_vm2, %v1372_v3  ;;  %1271 = vmatpush3.msra.mxu0 %v982_v59 }
0x1034   :  { %1272 = vmatprep.subr.mxu0 %v1372_v3 }
0x1035   :  { %1273 = vmatpush3.msra.mxu0 %v981_v45 }
0x1036   :  { %1274 = vmatprep.subr.mxu0 %v1372_v3 }
0x1037   :  { %1275 = vmatpush3.msra.mxu0 %v980_v46 }
0x1038   :  { %1276 = vmatprep.subr.mxu0 %v1372_v3 }
0x1039   :  { %1277 = vmatpush3.msra.mxu0 %v979_v47 }
0x10f2   :  { %v850_v16 = vpop.f32.mrf.mxu0 }
0x10f3   :  { %v854_v17 = vadd.f32 %v850_v16, %v168_v15 }
0x10f4   :  { %v1258_v18 = vpop.f32.mrf.mxu0 }
0x10f5   :  { %1334 = vtanh.f32 %v854_v17  ;;  %v1103_v20 = vmul.f32 -1.442695, %v854_v17 }
0x10f7   :  { %1336 = vpow2.f32 %v1103_v20 }
0x1102   :  { %v1335_v19 = vpop.eup %1334 }
0x1103   :  { %864 = vrot.lane.b32.xlu0 %v1335_v19, %s1374_s15 }
0x1104   :  { %v1337_v21 = vpop.eup %1336 }
0x1105   :  { %v858_v22 = vadd.f32 1.0, %v1337_v21 }
0x1107   :  { %1338 = vrcp.f32 %v858_v22 }
0x1114   :  { %v1339_v23 = vpop.eup %1338 }
0x1115   :  { %v862_v26 = vmul.f32 %v1339_v23, %v772_v57 }
0x1175   :  { %v865_v24 = vpop.permute.xlu0 %864 }
0x1176   :  { %v867_v25 = vmul.f32 %v1339_v23, %v865_v24 }
0x1178   :  { %869 = vrot.lane.b32.xlu1 %v867_v25, %s1375_s3 }
0x11ea   :  { %v870_v27 = vpop.permute.xlu1 %869 }
0x11eb   :  { %v872_v60 = vadd.f32 %v870_v27, %v862_v26 }
0x11ed   :  { %1340 = vtanh.f32 %v872_v60 }
0x11fa   :  { %v1341_v28 = vpop.eup %1340 }
0x11fb   :  { %875 = vrot.lane.b32.xlu0 %v1341_v28, %s1374_s15 }
0x126d   :  { %v876_v29 = vpop.permute.xlu0 %875 }
0x126e   :  { %v878_v30 = vmul.f32 %v1339_v23, %v876_v29 }
0x1270   :  { %880 = vrot.lane.b32.xlu1 %v878_v30, %s1375_s3 }
0x12e2   :  { %v881_v31 = vpop.permute.xlu1 %880 }
0x12e3   :  { %1268 = vmatmul.mubr.msk.f32.vlgmr.msra.gmra.mxu1 %vm180_vm3, %v881_v31 }
0x13a3   :  { %v950_v33 = vpop.f32.mrf.mxu1 }
0x13a4   :  { %v954_v34 = vadd.f32 %v950_v33, %v173_v32 }
0x13a5   :  { %v1269_v35 = vpop.f32.mrf.mxu1 }
0x13a6   :  { %1342 = vtanh.f32 %v954_v34  ;;  %v1105_v37 = vmul.f32 -1.442695, %v954_v34 }
0x13a8   :  { %1344 = vpow2.f32 %v1105_v37 }
0x13b3   :  { %v1343_v36 = vpop.eup %1342 }
0x13b4   :  { %964 = vrot.lane.b32.xlu0 %v1343_v36, %s1374_s15 }
0x13b5   :  { %v1345_v38 = vpop.eup %1344 }
0x13b6   :  { %v958_v39 = vadd.f32 1.0, %v1345_v38 }
0x13b8   :  { %1346 = vrcp.f32 %v958_v39 }
0x13c5   :  { %v1347_v40 = vpop.eup %1346 }
0x13c6   :  { %v962_v43 = vmul.f32 %v1347_v40, %v872_v60 }
0x1426   :  { %v965_v41 = vpop.permute.xlu0 %964 }
0x1427   :  { %v967_v42 = vmul.f32 %v1347_v40, %v965_v41 }
0x1429   :  { %969 = vrot.lane.b32.xlu1 %v967_v42, %s1375_s3 }
0x149b   :  { %v970_v44 = vpop.permute.xlu1 %969 }
0x149c   :  { %v972_v11 = vadd.f32 %v970_v44, %v962_v43 }
0x149e   :  { %1348 = vtanh.f32 %v972_v11 }
0x14ab   :  { %v1349_v48 = vpop.eup %1348 }
0x14ac   :  { %975 = vrot.lane.b32.xlu0 %v1349_v48, %s1374_s15 }
0x151e   :  { %v976_v49 = vpop.permute.xlu0 %975 }
0x151f   :  { %v978_v50 = vmul.f32 %v1347_v40, %v976_v49 }
0x1521   :  { %991 = vrot.lane.b32.xlu1 %v978_v50, %s1375_s3 }
0x1593   :  { %v992_v51 = vpop.permute.xlu1 %991 }
0x1594   :  { %1279 = vmatmul.mubr.msk.f32.vlgmr.msra.gmra.mxu0 %vm180_vm3, %v992_v51 }
0x1654   :  { %v1061_v53 = vpop.f32.mrf.mxu0 }
0x1655   :  { %v1062_v3 = vadd.f32 %v1106_v52, %v1061_v53 }
0x1656   :  { %v1280_v54 = vpop.f32.mrf.mxu0 }
0x1657   :  { %1066 = vst.msk [vmem:[#allocation2] sm:$0x3] %vm1065_vm4, %v1062_v3 }
0x1658   :  { %1361 = shalt.err (!%p1358_p4)
}
0x1659   :  { %1076 = dma.vmem_to_hbm [thread:$0]  %s1074_s4, 32, %s1649_s6, [#allocation3]  }
0x165a   :  { %1370 = dma.done.wait [#allocation3], 32  }
0x165b   :  { %1371 = vsyncadd [#allocation3], 4294967264 }
0x165c   :  { %1080 = vsyncpa [#allocation3], 1 }

</bundles_post_ra>
